<compile_context>
chip_gen: v6e
topology: v6e:2x2x1
jax: 0.10.0
libtpu: 0.0.40
codegen_flags: <defaults>
</compile_context>

<pallas_src>
import jax
import jax.numpy as jnp
from jax import lax
from jax.experimental import pallas as pl
from jax.experimental.pallas import tpu as pltpu

KERNEL_SIZE = 7
PAD = KERNEL_SIZE // 2

BT = 8                               # batch rows packed per grid step
LANE = 128                           # lane quantum
_VMEM_LIMIT = 48 * 1024 * 1024       # > scoped defaults, < v7x 64 MiB physical
_X_BLOCK_BUDGET = 8 * 1024 * 1024    # bytes per x block (double-buffered -> 16 MiB)


def _round_up(n: int, m: int) -> int:
    return ((n + m - 1) // m) * m


def _pool_kernel(x_ref, avg_ref, max_ref):
    # x_ref: (BT, C, TL) in the input dtype; avg/max: (BT, TL) f32.
    c = x_ref.shape[1]
    x = x_ref[...]
    s = jnp.sum(x, axis=1, dtype=jnp.float32)        # accumulate in f32
    m = jnp.max(x, axis=1).astype(jnp.float32)       # max in input dtype, then cast
    avg_ref[...] = s / jnp.float32(c)
    max_ref[...] = m


def _conv_kernel(w_ref, avg_ref, max_ref, o_ref):
    # w_ref: (2, K) f32 in SMEM (row 0 -> avg channel, row 1 -> max channel).
    # avg/max: (BT, Lp) f32 VMEM; o_ref: (BT, Lp) output tile.
    bt, lp = avg_ref.shape
    p = jnp.concatenate([avg_ref[...], max_ref[...]], axis=0)    # (2*BT, Lp)
    lane = lax.broadcasted_iota(jnp.int32, (1, lp), 1)
    row = lax.broadcasted_iota(jnp.int32, (2 * bt, 1), 0)

    acc = jnp.zeros((2 * bt, lp), jnp.float32)
    # Cross-correlation with zero padding (nn.Conv1d, padding=K//2, bias=False):
    #   out[l] = sum_k w[0,k]*avg[l+k-PAD] + w[1,k]*max[l+k-PAD]
    for k in range(KERNEL_SIZE):
        s = k - PAD
        valid = jnp.logical_and(lane + s >= 0, lane + s < lp)
        shifted = jnp.where(valid, jnp.roll(p, -s, axis=-1), 0.0)
        w_col = jnp.where(row < bt, w_ref[0, k], w_ref[1, k])    # (2*BT, 1)
        acc = acc + w_col * shifted

    conv = acc[:bt, :] + acc[bt:, :]                             # (BT, Lp)
    o_ref[...] = jax.nn.sigmoid(conv).astype(o_ref.dtype)


def spatial_attention(x: jax.Array, weight: jax.Array) -> jax.Array:
    """x: (B, C, L); weight: (1, 2, K) conv weight (no bias). Returns (B, 1, L)."""
    B, C, L = x.shape
    w2 = weight.reshape(2, KERNEL_SIZE).astype(jnp.float32)

    B_pad = _round_up(B, BT)
    L_pad = _round_up(L, LANE)

    # Lane tile for the pooling stage: largest of {2048,...,128} that divides
    # L_pad and keeps one (BT, C, TL) x block within the VMEM budget.
    itemsize = jnp.dtype(x.dtype).itemsize
    max_tl = _X_BLOCK_BUDGET // max(1, BT * C * itemsize)
    TL = LANE
    for cand in (2048, 1024, 512, 256, 128):
        if cand <= max_tl and L_pad % cand == 0:
            TL = cand
            break

    if (B_pad, L_pad) != (B, L):
        x_p = jnp.pad(x, ((0, B_pad - B), (0, 0), (0, L_pad - L)))
    else:
        x_p = x

    # ---- Stage 1: channel-wise mean / max pooling (all the HBM bytes) ----
    avg, mx = pl.pallas_call(
        _pool_kernel,
        out_shape=(jax.ShapeDtypeStruct((B_pad, L_pad), jnp.float32),
                   jax.ShapeDtypeStruct((B_pad, L_pad), jnp.float32)),
        grid=(B_pad // BT, L_pad // TL),
        in_specs=[pl.BlockSpec((BT, C, TL), lambda b, l: (b, 0, l))],
        out_specs=(pl.BlockSpec((BT, TL), lambda b, l: (b, l)),
                   pl.BlockSpec((BT, TL), lambda b, l: (b, l))),
        compiler_params=pltpu.CompilerParams(
            dimension_semantics=("parallel", "parallel"),
            vmem_limit_bytes=_VMEM_LIMIT),
    )(x_p)

    # ---- Stage 2: 7-tap conv over [avg; max] + sigmoid (tiny traffic) ----
    # TODO(synk): for extreme L (pooled block > ~16 MiB) add an L-tile axis
    # here with a +-3 lane halo; unnecessary for realistic CBAM lengths.
    att = pl.pallas_call(
        _conv_kernel,
        out_shape=jax.ShapeDtypeStruct((B_pad, L_pad), x.dtype),
        grid=(B_pad // BT,),
        in_specs=[
            pl.BlockSpec(memory_space=pltpu.MemorySpace.SMEM),   # conv weights
            pl.BlockSpec((BT, L_pad), lambda b: (b, 0)),
            pl.BlockSpec((BT, L_pad), lambda b: (b, 0)),
        ],
        out_specs=pl.BlockSpec((BT, L_pad), lambda b: (b, 0)),
        compiler_params=pltpu.CompilerParams(
            dimension_semantics=("parallel",),
            vmem_limit_bytes=_VMEM_LIMIT),
    )(w2, avg, mx)

    return att[:B, :L].reshape(B, 1, L)


def spatial_attention_ref(x: jax.Array, weight: jax.Array) -> jax.Array:
    """Pure-JAX reference mirroring the PyTorch forward."""
    avg = jnp.mean(x, axis=1, keepdims=True)
    mx = jnp.max(x, axis=1, keepdims=True)
    spatial_input = jnp.concatenate([avg, mx], axis=1)            # (B, 2, L)
    conv = lax.conv_general_dilated(
        spatial_input, weight,
        window_strides=(1,), padding=[(PAD, PAD)],
        dimension_numbers=("NCH", "OIH", "NCH"))
    return jax.nn.sigmoid(conv)


if __name__ == "__main__":
    key = jax.random.PRNGKey(0)
    kx, kw = jax.random.split(key)

    B, C, L = 2, 4, 16
    x = jax.random.normal(kx, (B, C, L), dtype=jnp.float32)
    # Deterministic synthetic conv weight, shape (out=1, in=2, K=7), no bias.
    weight = jax.random.normal(kw, (1, 2, KERNEL_SIZE), dtype=jnp.float32) * 0.1

    out = spatial_attention(x, weight)
    out = jax.block_until_ready(out)

    ref = spatial_attention_ref(x, weight)
    assert out.shape == (B, 1, L), out.shape
    assert jnp.allclose(out, ref, atol=1e-5, rtol=1e-5), (
        f"max abs err {jnp.max(jnp.abs(out - ref))}")

    print("KERNEL_OK")
</pallas_src>

<mosaic_0001>
module attributes {stable_mosaic.version = 11 : i64} {
  func.func @_pool_kernel(%arg0: i32, %arg1: i32, %arg2: memref<8x4x128xf32, #tpu.memory_space<vmem>>, %arg3: memref<8x128xf32, #tpu.memory_space<vmem>>, %arg4: memref<8x128xf32, #tpu.memory_space<vmem>>) attributes {dimension_semantics = [#tpu.dimension_semantics<parallel>, #tpu.dimension_semantics<parallel>], iteration_bounds = array<i64: 1, 1>, scalar_prefetch = 0 : i64, scratch_operands = 0 : i64, tpu.core_type = #tpu.core_type<tc>, window_params = [{transform_indices = @transform_0, window_bounds = array<i64: 8, 4, 128>}, {transform_indices = @transform_1, window_bounds = array<i64: 8, 128>}, {transform_indices = @transform_2, window_bounds = array<i64: 8, 128>}]} {
    %c0 = arith.constant 0 : index
    %c0_0 = arith.constant 0 : index
    %c0_1 = arith.constant 0 : index
    %0 = vector.load %arg2[%c0, %c0_0, %c0_1] : memref<8x4x128xf32, #tpu.memory_space<vmem>>, vector<8x4x128xf32>
    %cst = arith.constant dense<0.000000e+00> : vector<8x128xf32>
    %1 = vector.multi_reduction <add>, %0, %cst [1] : vector<8x4x128xf32> to vector<8x128xf32>
    %cst_2 = arith.constant dense<0xFF800000> : vector<8x128xf32>
    %2 = vector.multi_reduction <maximumf>, %0, %cst_2 [1] : vector<8x4x128xf32> to vector<8x128xf32>
    %cst_3 = arith.constant 4.000000e+00 : f32
    %3 = vector.broadcast %cst_3 : f32 to vector<8x128xf32>
    %4 = arith.divf %1, %3 : vector<8x128xf32>
    %c0_4 = arith.constant 0 : index
    %c0_5 = arith.constant 0 : index
    %5 = vector.load %arg3[%c0_4, %c0_5] : memref<8x128xf32, #tpu.memory_space<vmem>>, vector<8x128xf32>
    tpu.vector_store %arg3[%c0_4, %c0_5], %4 {strides = array<i32>} : memref<8x128xf32, #tpu.memory_space<vmem>>, vector<8x128xf32>,
    %c0_6 = arith.constant 0 : index
    %c0_7 = arith.constant 0 : index
    %6 = vector.load %arg4[%c0_6, %c0_7] : memref<8x128xf32, #tpu.memory_space<vmem>>, vector<8x128xf32>
    tpu.vector_store %arg4[%c0_6, %c0_7], %2 {strides = array<i32>} : memref<8x128xf32, #tpu.memory_space<vmem>>, vector<8x128xf32>,
    return
  }
  func.func @transform_0(%arg0: i32, %arg1: i32) -> (i32, i32, i32) {
    %c0_i32 = arith.constant 0 : i32
    %c0_i32_0 = arith.constant 0 : i32
    return %arg0, %c0_i32, %arg1 : i32, i32, i32
  }
  func.func @transform_1(%arg0: i32, %arg1: i32) -> (i32, i32) {
    %c0_i32 = arith.constant 0 : i32
    return %arg0, %arg1 : i32, i32
  }
  func.func @transform_2(%arg0: i32, %arg1: i32) -> (i32, i32) {
    %c0_i32 = arith.constant 0 : i32
    return %arg0, %arg1 : i32, i32
  }
}

</mosaic_0001>

<bundles_post_ra>
// kernel: tpu_custom_call.1
= control target key start
LH: loop header
LB: loop body
LE: loop exit
PB: predicated region body
PF: predicated region fallthrough
CT: control target
= control target key end

     0   :  { %8 = vsyncpa [#allocation3], 0  ;;  %s388_s0 = inlined_call_operand.hbm [shape: f32[8,4,128], index: 0, kind: input, shape index: {}]   ;;  %s389_s1 = inlined_call_operand.hbm [shape: f32[8,128], index: 1, kind: output, shape index: {0}]   ;;  %s390_s2 = inlined_call_operand.hbm [shape: f32[8,128], index: 2, kind: output, shape index: {1}]  }
   0x1   :  { %9 = vsyncpa [#allocation4], 0 }
   0x2   :  { %10 = vsyncpa [#allocation7], 0  ;;  %s297_s9 = smov [#allocation2]  }
   0x3   :  { %s16_s10 = sshll.u32 %s297_s9, 4  ;;  %s17_s10 = int_to_ptr.vmem [resolvable:$true] %s16_s10 }
   0x4   :  { %s239_s11 = scalar_lea.vmem %s17_s10, 512  ;;  %p244_p1 = scmp.lt.s32.totalorder %s17_s10, %s17_s10 }
   0x5   :  { %p240_p0 = scmp.ne.s32.totalorder %s17_s10, %s239_s11  ;;  %p245_p2 = scmp.lt.s32.totalorder %s239_s11, %s239_s11 }
   0x7   :  { %p246_p3 = por %p245_p2, %p244_p1 }
   0x9   :  { %p247_p4 = pnand %p246_p3, %p240_p0 }
   0xb   :  { %250 = shalt.err (!%p247_p4)
}
   0xc   :  { %s298_s12 = smov 64   ;;  %s299_s13 = smov 4  }
   0xd   :  { %22 = dma.hbm_to_vmem [thread:$0]  %s388_s0, 512, %s17_s10, [#allocation3], %s298_s12, %s298_s12, %s299_s13  }
   0xe   :  { %291 = dma.done.wait [#allocation3], 512  }
   0xf   :  { %292 = vsyncadd [#allocation3], 4294966784  ;;  %vm34_vm0 = vcmask 1043456   ;;  %v320_v0 = vld [vmem:[#allocation2] sm:$0xf]  ;;  %vm164_vm1 = vcmask 1041409  }
  0x10   :  { %v322_v1 = vld [vmem:[#allocation2 + $0x4] sm:$0xf]  ;;  %v324_v2 = vld [vmem:[#allocation2 + $0x8] sm:$0xf]  ;;  %v326_v3 = vld [vmem:[#allocation2 + $0xc] sm:$0xf] }
  0x11   :  { %v328_v4 = vld [vmem:[#allocation2 + $0x10] sm:$0xf]  ;;  %v330_v5 = vld [vmem:[#allocation2 + $0x14] sm:$0xf]  ;;  %v332_v6 = vld [vmem:[#allocation2 + $0x18] sm:$0xf] }
  0x12   :  { %v35_v7 = vsel %vm34_vm0, %v320_v0, 0.0  ;;  %v42_v8 = vsel %vm34_vm0, %v322_v1, 0.0  ;;  %v338_v9 = vld [vmem:[#allocation2 + $0x1c] sm:$0xf]  ;;  %v49_v12 = vsel %vm34_vm0, %v324_v2, 0.0  ;;  %v56_v13 = vsel %vm34_vm0, %v326_v3, 0.0 }
  0x13   :  { %v36_v10 = vrot.slane %v35_v7, 4  ;;  %v43_v11 = vrot.slane %v42_v8, 4  ;;  %v50_v14 = vrot.slane %v49_v12, 4  ;;  %v57_v15 = vrot.slane %v56_v13, 4  ;;  %s300_s0 = smov [#allocation5]  }
  0x14   :  { %v63_v16 = vsel %vm34_vm0, %v328_v4, 0.0  ;;  %v70_v17 = vsel %vm34_vm0, %v330_v5, 0.0  ;;  %v77_v24 = vsel %vm34_vm0, %v332_v6, 0.0  ;;  %v84_v25 = vsel %vm34_vm0, %v338_v9, 0.0  ;;  %s203_s16 = sshll.u32 %s300_s0, 4  ;;  %s204_s16 = int_to_ptr.vmem [resolvable:$true] %s203_s16 }
  0x15   :  { %v37_v18 = vadd.f32 %v36_v10, %v35_v7  ;;  %v44_v19 = vadd.f32 %v43_v11, %v42_v8  ;;  %v64_v20 = vrot.slane %v63_v16, 4  ;;  %v71_v21 = vrot.slane %v70_v17, 4  ;;  %s251_s17 = scalar_lea.vmem %s204_s16, 128  ;;  %p256_p6 = scmp.lt.s32.totalorder %s204_s16, %s204_s16 }
  0x16   :  { %v51_v22 = vadd.f32 %v50_v14, %v49_v12  ;;  %v58_v23 = vadd.f32 %v57_v15, %v56_v13  ;;  %vm166_vm2 = vcmask 1042434   ;;  %v78_v32 = vrot.slane %v77_v24, 4  ;;  %p252_p5 = scmp.ne.s32.totalorder %s204_s16, %s251_s17  ;;  %p257_p7 = scmp.lt.s32.totalorder %s251_s17, %s251_s17 }
  0x17   :  { %v38_v26 = vrot.slane %v37_v18, 2  ;;  %v45_v27 = vrot.slane %v44_v19, 2  ;;  %v65_v28 = vadd.f32 %v64_v20, %v63_v16  ;;  %v72_v29 = vadd.f32 %v71_v21, %v70_v17 }
  0x18   :  { %v52_v30 = vrot.slane %v51_v22, 2  ;;  %v59_v31 = vrot.slane %v58_v23, 2  ;;  %v85_v33 = vrot.slane %v84_v25, 4  ;;  %vm168_vm3 = vcmask 1043459   ;;  %p258_p8 = por %p257_p7, %p256_p6 }
  0x19   :  { %v39_v34 = vadd.f32 %v38_v26, %v37_v18  ;;  %v46_v35 = vadd.f32 %v45_v27, %v44_v19  ;;  %v66_v36 = vrot.slane %v65_v28, 2  ;;  %v73_v37 = vrot.slane %v72_v29, 2 }
  0x1a   :  { %vm170_vm4 = vcmask 1044484   ;;  %v53_v38 = vadd.f32 %v52_v30, %v51_v22  ;;  %v60_v39 = vadd.f32 %v59_v31, %v58_v23  ;;  %v79_v40 = vadd.f32 %v78_v32, %v77_v24  ;;  %p259_p9 = pnand %p258_p8, %p252_p5 }
  0x1b   :  { %v86_v41 = vadd.f32 %v85_v33, %v84_v25  ;;  %vm172_vm5 = vcmask 1045509   ;;  %v40_v42 = vrot.slane %v39_v34, 1  ;;  %v47_v43 = vrot.slane %v46_v35, 1 }
  0x1c   :  { %v67_v44 = vadd.f32 %v66_v36, %v65_v28  ;;  %v74_v45 = vadd.f32 %v73_v37, %v72_v29  ;;  %vm174_vm6 = vcmask 1046534   ;;  %v54_v46 = vrot.slane %v53_v38, 1 }
  0x1d   :  { %v61_v47 = vrot.slane %v60_v39, 1  ;;  %v80_v48 = vrot.slane %v79_v40, 2  ;;  %v87_v49 = vrot.slane %v86_v41, 2  ;;  %vm176_vm7 = vcmask 1047559  }
  0x1e   :  { %v41_v50 = vadd.f32 %v40_v42, %v39_v34  ;;  %v48_v51 = vadd.f32 %v47_v43, %v46_v35  ;;  %v68_v52 = vrot.slane %v67_v44, 1  ;;  %v75_v53 = vrot.slane %v74_v45, 1 }
  0x1f   :  { %v55_v54 = vadd.f32 %v54_v46, %v53_v38  ;;  %v62_v55 = vadd.f32 %v61_v47, %v60_v39  ;;  %v81_v56 = vadd.f32 %v80_v48, %v79_v40  ;;  %v88_v57 = vadd.f32 %v87_v49, %v86_v41 }
  0x20   :  { %v69_v58 = vadd.f32 %v68_v52, %v67_v44  ;;  %v76_v59 = vadd.f32 %v75_v53, %v74_v45  ;;  %v148_v60 = vmul.f32 0.25, %v41_v50  ;;  %v149_v61 = vmul.f32 0.25, %v48_v51 }
  0x21   :  { %v82_v62 = vrot.slane %v81_v56, 1  ;;  %v89_v63 = vrot.slane %v88_v57, 1  ;;  %v150_v7 = vmul.f32 0.25, %v55_v54  ;;  %v151_v8 = vmul.f32 0.25, %v62_v55 }
  0x22   :  { %v152_v10 = vmul.f32 0.25, %v69_v58  ;;  %v153_v11 = vmul.f32 0.25, %v76_v59  ;;  %v165_v12 = vsel %vm164_vm1, %v149_v61, %v148_v60  ;;  %v91_v13 = vsel %vm34_vm0, %v320_v0, -inf }
  0x23   :  { %v83_v14 = vadd.f32 %v82_v62, %v81_v56  ;;  %v90_v15 = vadd.f32 %v89_v63, %v88_v57  ;;  %v167_v16 = vsel %vm166_vm2, %v150_v7, %v165_v12  ;;  %v92_v17 = vrot.slane %v91_v13, 4 }
  0x24   :  { %v169_v18 = vsel %vm168_vm3, %v151_v8, %v167_v16  ;;  %v98_v19 = vsel %vm34_vm0, %v322_v1, -inf  ;;  %v105_v20 = vsel %vm34_vm0, %v324_v2, -inf  ;;  %v112_v21 = vsel %vm34_vm0, %v326_v3, -inf }
  0x25   :  { %v154_v22 = vmul.f32 0.25, %v83_v14  ;;  %v155_v0 = vmul.f32 0.25, %v90_v15  ;;  %v171_v23 = vsel %vm170_vm4, %v152_v10, %v169_v18  ;;  %v93_v24 = vmax.f32 %v91_v13, %v92_v17 }
  0x26   :  { %v173_v25 = vsel %vm172_vm5, %v153_v11, %v171_v23  ;;  %v99_v26 = vrot.slane %v98_v19, 4  ;;  %v106_v27 = vrot.slane %v105_v20, 4  ;;  %v113_v28 = vrot.slane %v112_v21, 4 }
  0x27   :  { %v175_v1 = vsel %vm174_vm6, %v154_v22, %v173_v25  ;;  %v94_v29 = vrot.slane %v93_v24, 2  ;;  %v119_v2 = vsel %vm34_vm0, %v328_v4, -inf  ;;  %v126_v3 = vsel %vm34_vm0, %v330_v5, -inf }
  0x28   :  { %v177_v30 = vsel %vm176_vm7, %v155_v0, %v175_v1  ;;  %v100_v31 = vmax.f32 %v98_v19, %v99_v26  ;;  %v107_v32 = vmax.f32 %v105_v20, %v106_v27  ;;  %v114_v33 = vmax.f32 %v112_v21, %v113_v28 }
  0x29   :  { %179 = vst [vmem:[#allocation5] sm:$0xff] %v177_v30  ;;  %v95_v34 = vmax.f32 %v93_v24, %v94_v29  ;;  %v120_v35 = vrot.slane %v119_v2, 4  ;;  %v127_v36 = vrot.slane %v126_v3, 4  ;;  %v133_v37 = vsel %vm34_vm0, %v332_v6, -inf }
  0x2a   :  { %v101_v38 = vrot.slane %v100_v31, 2  ;;  %v108_v39 = vrot.slane %v107_v32, 2  ;;  %v115_v40 = vrot.slane %v114_v33, 2  ;;  %v134_v4 = vrot.slane %v133_v37, 4 }
  0x2b   :  { %262 = shalt.err (!%p259_p9)
}
  0x2c   :  { %206 = dma.vmem_to_hbm [thread:$0]  %s204_s16, 128, %s389_s1, [#allocation4]   ;;  %v96_v5 = vrot.slane %v95_v34, 1  ;;  %v121_v41 = vmax.f32 %v119_v2, %v120_v35  ;;  %v128_v42 = vmax.f32 %v126_v3, %v127_v36  ;;  %v140_v6 = vsel %vm34_vm0, %v338_v9, -inf }
  0x2d   :  { %v102_v43 = vmax.f32 %v100_v31, %v101_v38  ;;  %v109_v44 = vmax.f32 %v107_v32, %v108_v39  ;;  %v116_v45 = vmax.f32 %v114_v33, %v115_v40  ;;  %v135_v46 = vmax.f32 %v133_v37, %v134_v4  ;;  %s301_s1 = smov [#allocation6]  }
  0x2e   :  { %v97_v47 = vmax.f32 %v95_v34, %v96_v5  ;;  %v122_v48 = vrot.slane %v121_v41, 2  ;;  %v129_v49 = vrot.slane %v128_v42, 2  ;;  %v141_v50 = vrot.slane %v140_v6, 4  ;;  %s213_s20 = sshll.u32 %s301_s1, 4  ;;  %s214_s20 = int_to_ptr.vmem [resolvable:$true] %s213_s20 }
  0x2f   :  { %v103_v51 = vrot.slane %v102_v43, 1  ;;  %v110_v52 = vrot.slane %v109_v44, 1  ;;  %v117_v53 = vrot.slane %v116_v45, 1  ;;  %v136_v54 = vrot.slane %v135_v46, 2  ;;  %s271_s21 = scalar_lea.vmem %s214_s20, 128  ;;  %p276_p11 = scmp.lt.s32.totalorder %s214_s20, %s214_s20 }
  0x30   :  { %v123_v55 = vmax.f32 %v121_v41, %v122_v48  ;;  %v130_v56 = vmax.f32 %v128_v42, %v129_v49  ;;  %v142_v57 = vmax.f32 %v140_v6, %v141_v50  ;;  %p272_p10 = scmp.ne.s32.totalorder %s214_s20, %s271_s21  ;;  %p277_p12 = scmp.lt.s32.totalorder %s271_s21, %s271_s21 }
  0x31   :  { %v104_v58 = vmax.f32 %v102_v43, %v103_v51  ;;  %v111_v59 = vmax.f32 %v109_v44, %v110_v52  ;;  %v118_v60 = vmax.f32 %v116_v45, %v117_v53  ;;  %v137_v61 = vmax.f32 %v135_v46, %v136_v54 }
  0x32   :  { %v124_v9 = vrot.slane %v123_v55, 1  ;;  %v131_v62 = vrot.slane %v130_v56, 1  ;;  %v143_v63 = vrot.slane %v142_v57, 2  ;;  %p278_p13 = por %p277_p12, %p276_p11 }
  0x33   :  { %v138_v7 = vrot.slane %v137_v61, 1  ;;  %v188_v8 = vsel %vm164_vm1, %v104_v58, %v97_v47 }
  0x34   :  { %v125_v10 = vmax.f32 %v123_v55, %v124_v9  ;;  %v132_v11 = vmax.f32 %v130_v56, %v131_v62  ;;  %v144_v12 = vmax.f32 %v142_v57, %v143_v63  ;;  %v189_v13 = vsel %vm166_vm2, %v111_v59, %v188_v8  ;;  %p279_p0 = pnand %p278_p13, %p272_p10 }
  0x35   :  { %v139_v14 = vmax.f32 %v137_v61, %v138_v7  ;;  %v190_v15 = vsel %vm168_vm3, %v118_v60, %v189_v13 }
  0x36   :  { %v145_v16 = vrot.slane %v144_v12, 1  ;;  %v191_v17 = vsel %vm170_vm4, %v125_v10, %v190_v15 }
  0x37   :  { %v192_v18 = vsel %vm172_vm5, %v132_v11, %v191_v17 }
  0x38   :  { %v146_v19 = vmax.f32 %v144_v12, %v145_v16  ;;  %v193_v20 = vsel %vm174_vm6, %v139_v14, %v192_v18 }
  0x3a   :  { %v194_v21 = vsel %vm176_vm7, %v146_v19, %v193_v20 }
  0x3b   :  { %196 = vst [vmem:[#allocation6] sm:$0xff] %v194_v21 }
  0x3c   :  { %282 = shalt.err (!%p279_p0)
}
  0x3d   :  { %216 = dma.vmem_to_hbm [thread:$0]  %s214_s20, 128, %s390_s2, [#allocation7]  }
  0x3e   :  { %293 = dma.done.wait [#allocation4], 128  }
  0x3f   :  { %294 = vsyncadd [#allocation4], 4294967168 }
  0x40   :  { %295 = dma.done.wait [#allocation7], 128  }
  0x41   :  { %296 = vsyncadd [#allocation7], 4294967168 }
  0x42   :  { %223 = vsyncpa [#allocation3], 1 }
  0x43   :  { %224 = vsyncpa [#allocation4], 1 }
  0x44   :  { %225 = vsyncpa [#allocation7], 1 }

</bundles_post_ra>
